<compile_context>
chip_gen: v5e
topology: v5e:2x2
jax: 0.10.0
libtpu: 0.0.40
codegen_flags: <defaults>
</compile_context>

<pallas_src>
import functools

import jax
import jax.numpy as jnp
from jax.experimental import pallas as pl
from jax.experimental.pallas import tpu as pltpu

_LANE = 128      # lane width (last dim of a vreg)
_SUBLANE = 8     # sublanes (second-to-last dim of a vreg)


def _round_up(x, m):
    return ((x + m - 1) // m) * m


def _chip_info():
    """Best-effort chip query: (vmem_capacity_bytes, mxu_tile, two_tensorcores)."""
    kind = ""
    try:
        kind = jax.devices()[0].device_kind.lower()
    except Exception:
        pass
    cap = None
    try:
        cap = int(pltpu.get_tpu_info().vmem_capacity_bytes)
    except Exception:
        cap = None
    if cap is None:
        cap = (64 << 20) if "v7" in kind else (128 << 20)
    mxu = 256 if ("v6" in kind or "v7" in kind) else 128
    two_tc = "v7" in kind
    return cap, mxu, two_tc


_VMEM_CAP, _MXU_DIM, _TWO_TC = _chip_info()
# Leave headroom: compiler scratch, semaphores and the double-buffered tiles all
# live under this limit.  ~54 MiB on v7x (64 MiB parts), ~108 MiB on v5e/v6e.
_VMEM_BUDGET = int(_VMEM_CAP * 0.85)


def _pad_dim(d):
    """Lane padding: at least 128; dims already >128 align to the MXU tile
    (256 on v6e/v7x) so odd multiples of 128 don't leave half the array idle."""
    if d <= _LANE:
        return _LANE
    return _round_up(d, _MXU_DIM)


def _divisor_tile(dim, cap, step):
    """Largest multiple of `step` that is <= cap and divides `dim` (dim % step == 0)."""
    t = max(step, (min(cap, dim) // step) * step)
    while dim % t != 0:
        t -= step
    return t


# ---------------------------------------------------------------------------
# Fused kernel: the WHOLE MLP in one body.
#   refs = (x_ref, w1_ref, b1_ref, ..., wL_ref, bL_ref, o_ref)
#   w_ref: pre-transposed, zero-padded bf16 weight (K_pad, N_pad)
#   b_ref: zero-padded f32 bias (1, N_pad)
#   Layer loop is unrolled statically; intermediates live in vregs/VMEM.
# ---------------------------------------------------------------------------
def _fused_mlp_kernel(*refs, activations):
    n_layers = len(activations)
    x_ref = refs[0]
    o_ref = refs[1 + 2 * n_layers]

    h = x_ref[...].astype(jnp.float32)                     # (tm, K0_pad) f32
    for l in range(n_layers):
        wt = refs[1 + 2 * l]                               # (K_pad, N_pad) bf16
        b = refs[2 + 2 * l]                                # (1,  N_pad)  f32
        # bf16 operands for the MXU, f32 accumulation; non-matmul math stays f32.
        h = jnp.dot(h.astype(jnp.bfloat16), wt[...],
                    preferred_element_type=jnp.float32) + b[...]
        act = activations[l]
        if act == "relu":
            h = jnp.maximum(h, 0.0)                        # VPU, f32
        elif act == "tanh":
            h = jnp.tanh(h)                                # EUP slot, f32
        # TODO(synk): if a bundle dump shows the single EUP slot binding on
        # narrow-K / wide-N tanh layers, swap to a VPU polynomial approximation.
    o_ref[...] = h.astype(o_ref.dtype)


# ---------------------------------------------------------------------------
# Fallback kernel: one Linear(+activation) layer, (M, N, K)-tiled, K-reduction
# on the last grid axis with an f32 VMEM accumulator (used when weights don't
# fit the resident-VMEM budget of the fused kernel).
# ---------------------------------------------------------------------------
def _tiled_linear_kernel(x_ref, w_ref, b_ref, o_ref, acc_ref, *, activation):
    @pl.when(pl.program_id(2) == 0)
    def _():
        acc_ref[...] = jnp.zeros_like(acc_ref)

    acc_ref[...] += jnp.dot(x_ref[...].astype(jnp.bfloat16), w_ref[...],
                            preferred_element_type=jnp.float32)

    @pl.when(pl.program_id(2) == pl.num_programs(2) - 1)
    def _():
        h = acc_ref[...] + b_ref[...]
        if activation == "relu":
            h = jnp.maximum(h, 0.0)
        elif activation == "tanh":
            h = jnp.tanh(h)
        o_ref[...] = h.astype(o_ref.dtype)


def _linear_layer_pallas(x_pad, w_t_bf16, b_pad_f32, activation):
    Mp, Kp = x_pad.shape
    _, Np = w_t_bf16.shape
    tm = _divisor_tile(Mp, 256, _SUBLANE)
    tn = _divisor_tile(Np, 512, _LANE)
    tk = _divisor_tile(Kp, 512, _LANE)
    return pl.pallas_call(
        functools.partial(_tiled_linear_kernel, activation=activation),
        out_shape=jax.ShapeDtypeStruct((Mp, Np), jnp.float32),
        grid=(Mp // tm, Np // tn, Kp // tk),
        in_specs=[
            pl.BlockSpec((tm, tk), lambda i, j, k: (i, k)),
            pl.BlockSpec((tk, tn), lambda i, j, k: (k, j)),
            pl.BlockSpec((1, tn), lambda i, j, k: (0, j)),
        ],
        out_specs=pl.BlockSpec((tm, tn), lambda i, j, k: (i, j)),
        scratch_shapes=[pltpu.VMEM((tm, tn), jnp.float32)],
        compiler_params=pltpu.CompilerParams(
            dimension_semantics=("parallel", "parallel", "arbitrary"),
            vmem_limit_bytes=_VMEM_BUDGET,
        ),
    )(x_pad, w_t_bf16, b_pad_f32)


# ---------------------------------------------------------------------------
# Fused-path wrapper: one pallas_call for the whole network, tiled over batch.
# ---------------------------------------------------------------------------
def fused_mlp_pallas(x, padded_params, activations, out_dim, *, avail, per_row):
    M, K0 = x.shape
    K0_pad = padded_params[0][0].shape[0]
    N_last_pad = padded_params[-1][0].shape[1]

    # Batch tile from the VMEM budget (multiple of 8 sublanes).
    m8 = _round_up(M, _SUBLANE)
    tm_cap = 256 if _TWO_TC else 512          # v7x: 64 MiB VMEM -> smaller cap
    tm_budget = max(_SUBLANE, (avail // per_row) // _SUBLANE * _SUBLANE)
    tm = min(tm_cap, tm_budget, m8)
    # v7x megacore: ensure >=2 batch tiles so both TensorCores get work.
    # TODO(synk): if profiling shows one TC idle, switch to pltpu.CORE_PARALLEL.
    if _TWO_TC and m8 >= 2 * _SUBLANE:
        tm = min(tm, max(_SUBLANE, (m8 // 2) // _SUBLANE * _SUBLANE))
    M_pad = _round_up(M, tm)

    # Skip wrapper-side padding when shapes are already aligned (no extra HBM pass).
    if M_pad == M and K0_pad == K0:
        x_in = x
    else:
        x_in = jnp.zeros((M_pad, K0_pad), x.dtype).at[:M, :K0].set(x)

    # Activation tile walks the batch; weight/bias blocks are full-array,
    # grid-invariant and single-buffered (fetched once, kept resident).
    flat_args = []
    in_specs = [pl.BlockSpec((tm, K0_pad), lambda i: (i, 0))]
    for w_t, b_p in padded_params:
        kp, np_ = w_t.shape
        flat_args.extend([w_t, b_p])
        in_specs.append(pl.BlockSpec((kp, np_), lambda i: (0, 0),
                                     pipeline_mode=pl.Buffered(1)))
        in_specs.append(pl.BlockSpec((1, np_), lambda i: (0, 0),
                                     pipeline_mode=pl.Buffered(1)))
    out_specs = pl.BlockSpec((tm, N_last_pad), lambda i: (i, 0))

    # Advisory cost estimate for XLA scheduling.
    flops = 0
    bytes_accessed = M_pad * K0_pad * 4 + M_pad * N_last_pad * 4
    transcendentals = 0
    for (w_t, b_p), act in zip(padded_params, activations):
        kp, np_ = w_t.shape
        flops += 2 * M_pad * kp * np_
        bytes_accessed += w_t.size * 2 + b_p.size * 4
        if act == "tanh":
            transcendentals += M_pad * np_

    kernel = functools.partial(_fused_mlp_kernel, activations=tuple(activations))

    out_pad = pl.pallas_call(
        kernel,
        out_shape=jax.ShapeDtypeStruct((M_pad, N_last_pad), x.dtype),
        grid=(M_pad // tm,),
        in_specs=in_specs,
        out_specs=out_specs,
        compiler_params=pltpu.CompilerParams(
            dimension_semantics=("parallel",),     # batch tiles -> megacore on v7x
            vmem_limit_bytes=_VMEM_BUDGET,
        ),
        cost_estimate=pl.CostEstimate(
            flops=flops,
            transcendentals=transcendentals,
            bytes_accessed=bytes_accessed,
        ),
    )(x_in, *flat_args)

    if M_pad == M and N_last_pad == out_dim:
        return out_pad
    return out_pad[:M, :out_dim]


# ---------------------------------------------------------------------------
# Fallback-path wrapper: per-layer tiled pallas_calls (weights streamed from HBM).
# ---------------------------------------------------------------------------
def layered_mlp_pallas(x, padded_params, activations, out_dim):
    M, K0 = x.shape
    K0_pad = padded_params[0][0].shape[0]
    N_last_pad = padded_params[-1][0].shape[1]
    m8 = _round_up(M, _SUBLANE)
    if m8 == M and K0_pad == K0:
        h = x
    else:
        h = jnp.zeros((m8, K0_pad), x.dtype).at[:M, :K0].set(x)
    for (w_t, b_p), act in zip(padded_params, activations):
        h = _linear_layer_pallas(h, w_t, b_p, act)
    if m8 == M and N_last_pad == out_dim:
        return h
    return h[:M, :out_dim]


def mlp_forward(x, padded_params, activations, out_dim, *, force_layered=False):
    # Resident-VMEM accounting for the fused path (weights single-buffered,
    # activation input/output tiles double-buffered, widest intermediate once).
    resident = sum(int(w.size) * w.dtype.itemsize + int(b.size) * b.dtype.itemsize
                   for w, b in padded_params)
    K0_pad = padded_params[0][0].shape[0]
    N_last_pad = padded_params[-1][0].shape[1]
    max_dim = max([K0_pad] + [w.shape[1] for w, _ in padded_params])
    per_row = 2 * 4 * K0_pad + 2 * 4 * N_last_pad + 6 * max_dim   # bytes / batch row
    avail = _VMEM_BUDGET - resident
    fused_ok = (not force_layered) and (avail >= per_row * _SUBLANE)
    if fused_ok:
        return fused_mlp_pallas(x, padded_params, activations, out_dim,
                                avail=avail, per_row=per_row)
    return layered_mlp_pallas(x, padded_params, activations, out_dim)


# ---------------------------------------------------------------------------
# FeedforwardNN: mirrors the PyTorch module (list of (size, activation) pairs).
# Activations are strings {None, "relu", "tanh"} standing in for the nn.Module
# activation instances of the original spec.
# ---------------------------------------------------------------------------
class FeedforwardNN:
    def __init__(self, layers_list, input_size, key):
        self.input_size = input_size
        self.params = []       # original (W (N,K) f32, b (N,) f32, activation)
        self.padded = []       # (W_t_pad (K_pad,N_pad) bf16, b_pad (1,N_pad) f32)
        self.activations = []
        in_dim = input_size
        for size, activation in layers_list:
            key, wk, bk = jax.random.split(key, 3)
            bound = 1.0 / jnp.sqrt(jnp.float32(in_dim))
            W = jax.random.uniform(wk, (size, in_dim), jnp.float32, -bound, bound)
            b = jax.random.uniform(bk, (size,), jnp.float32, -bound, bound)
            self.params.append((W, b, activation))
            self.activations.append(activation)

            # Pre-transpose + zero-pad ONCE at init; weights stored bf16 for the
            # MXU, bias stays f32 (added to the f32 accumulator in-kernel).
            k_pad = _pad_dim(in_dim)
            n_pad = _pad_dim(size)
            w_t_pad = (jnp.zeros((k_pad, n_pad), jnp.float32)
                       .at[:in_dim, :size].set(W.T).astype(jnp.bfloat16))
            b_pad = jnp.zeros((1, n_pad), jnp.float32).at[0, :size].set(b)
            self.padded.append((w_t_pad, b_pad))
            in_dim = size
        self.out_dim = in_dim

    def __call__(self, x, force_layered=False):
        return mlp_forward(x, self.padded, tuple(self.activations), self.out_dim,
                           force_layered=force_layered)


# Pure-JAX f32 reference for correctness checking.
def _reference_forward(params, x):
    for W, b, activation in params:
        x = x @ W.T + b
        if activation == "relu":
            x = jnp.maximum(x, 0.0)
        elif activation == "tanh":
            x = jnp.tanh(x)
    return x


if __name__ == "__main__":
    key = jax.random.PRNGKey(0)
    key, xk, pk = jax.random.split(key, 3)

    batch = 8
    input_size = 16
    layers_list = [(32, "relu"), (32, "tanh"), (8, None)]

    net = FeedforwardNN(layers_list, input_size, pk)
    x = jax.random.normal(xk, (batch, input_size), jnp.float32)

    ref = _reference_forward(net.params, x)

    # Fused single-kernel path (weights resident in VMEM).
    out = jax.block_until_ready(net(x))
    assert out.shape == (batch, 8), out.shape
    # bf16 MXU operands (f32 accumulation) -> tolerance loosened vs f32 reference.
    assert jnp.allclose(out, ref, atol=5e-2, rtol=5e-2), "fused mismatch vs reference"

    # Per-layer tiled fallback path (used when weights exceed the VMEM budget);
    # forced here so both code paths are exercised.
    out_l = jax.block_until_ready(net(x, force_layered=True))
    assert out_l.shape == (batch, 8), out_l.shape
    assert jnp.allclose(out_l, ref, atol=5e-2, rtol=5e-2), "layered mismatch vs reference"

    print("KERNEL_OK")
</pallas_src>

<mosaic_0001>
module attributes {stable_mosaic.version = 11 : i64} {
  func.func @_fused_mlp_kernel(%arg0: i32, %arg1: memref<8x128xf32, #tpu.memory_space<vmem>>, %arg2: memref<128x128xbf16, #tpu.memory_space<vmem>>, %arg3: memref<1x128xf32, #tpu.memory_space<vmem>>, %arg4: memref<128x128xbf16, #tpu.memory_space<vmem>>, %arg5: memref<1x128xf32, #tpu.memory_space<vmem>>, %arg6: memref<128x128xbf16, #tpu.memory_space<vmem>>, %arg7: memref<1x128xf32, #tpu.memory_space<vmem>>, %arg8: memref<8x128xf32, #tpu.memory_space<vmem>>) attributes {dimension_semantics = [#tpu.dimension_semantics<parallel>], iteration_bounds = array<i64: 1>, scalar_prefetch = 0 : i64, scratch_operands = 0 : i64, tpu.core_type = #tpu.core_type<tc>, window_params = [{transform_indices = @transform_0, window_bounds = array<i64: 8, 128>}, {pipeline_mode = #tpu.pipeline_mode<synchronous>, transform_indices = @transform_1, window_bounds = array<i64: 128, 128>}, {pipeline_mode = #tpu.pipeline_mode<synchronous>, transform_indices = @transform_2, window_bounds = array<i64: 1, 128>}, {pipeline_mode = #tpu.pipeline_mode<synchronous>, transform_indices = @transform_3, window_bounds = array<i64: 128, 128>}, {pipeline_mode = #tpu.pipeline_mode<synchronous>, transform_indices = @transform_4, window_bounds = array<i64: 1, 128>}, {pipeline_mode = #tpu.pipeline_mode<synchronous>, transform_indices = @transform_5, window_bounds = array<i64: 128, 128>}, {pipeline_mode = #tpu.pipeline_mode<synchronous>, transform_indices = @transform_6, window_bounds = array<i64: 1, 128>}, {transform_indices = @transform_7, window_bounds = array<i64: 8, 128>}]} {
    %c0 = arith.constant 0 : index
    %c0_0 = arith.constant 0 : index
    %0 = vector.load %arg1[%c0, %c0_0] : memref<8x128xf32, #tpu.memory_space<vmem>>, vector<8x128xf32>
    %1 = arith.truncf %0 : vector<8x128xf32> to vector<8x128xbf16>
    %c0_1 = arith.constant 0 : index
    %c0_2 = arith.constant 0 : index
    %2 = vector.load %arg2[%c0_1, %c0_2] : memref<128x128xbf16, #tpu.memory_space<vmem>>, vector<128x128xbf16>
    %cst = arith.constant dense<0.000000e+00> : vector<8x128xf32>
    %3 = tpu.matmul %1, %2, %cst {dimension_numbers = #tpu.dot_dimension_numbers<[1], [0], [0], [1], [0, 0, 1, 1], [], []>} : vector<8x128xbf16>, vector<128x128xbf16>, vector<8x128xf32> -> vector<8x128xf32>
    %c0_3 = arith.constant 0 : index
    %c0_4 = arith.constant 0 : index
    %4 = vector.load %arg3[%c0_3, %c0_4] : memref<1x128xf32, #tpu.memory_space<vmem>>, vector<1x128xf32>
    %5 = vector.broadcast %4 : vector<1x128xf32> to vector<8x128xf32>
    %6 = arith.addf %3, %5 : vector<8x128xf32>
    %cst_5 = arith.constant 0.000000e+00 : f32
    %7 = vector.broadcast %cst_5 : f32 to vector<8x128xf32>
    %8 = arith.maximumf %6, %7 : vector<8x128xf32>
    %9 = arith.truncf %8 : vector<8x128xf32> to vector<8x128xbf16>
    %c0_6 = arith.constant 0 : index
    %c0_7 = arith.constant 0 : index
    %10 = vector.load %arg4[%c0_6, %c0_7] : memref<128x128xbf16, #tpu.memory_space<vmem>>, vector<128x128xbf16>
    %cst_8 = arith.constant dense<0.000000e+00> : vector<8x128xf32>
    %11 = tpu.matmul %9, %10, %cst_8 {dimension_numbers = #tpu.dot_dimension_numbers<[1], [0], [0], [1], [0, 0, 1, 1], [], []>} : vector<8x128xbf16>, vector<128x128xbf16>, vector<8x128xf32> -> vector<8x128xf32>
    %c0_9 = arith.constant 0 : index
    %c0_10 = arith.constant 0 : index
    %12 = vector.load %arg5[%c0_9, %c0_10] : memref<1x128xf32, #tpu.memory_space<vmem>>, vector<1x128xf32>
    %13 = vector.broadcast %12 : vector<1x128xf32> to vector<8x128xf32>
    %14 = arith.addf %11, %13 : vector<8x128xf32>
    %15 = math.tanh %14 : vector<8x128xf32>
    %16 = arith.truncf %15 : vector<8x128xf32> to vector<8x128xbf16>
    %c0_11 = arith.constant 0 : index
    %c0_12 = arith.constant 0 : index
    %17 = vector.load %arg6[%c0_11, %c0_12] : memref<128x128xbf16, #tpu.memory_space<vmem>>, vector<128x128xbf16>
    %cst_13 = arith.constant dense<0.000000e+00> : vector<8x128xf32>
    %18 = tpu.matmul %16, %17, %cst_13 {dimension_numbers = #tpu.dot_dimension_numbers<[1], [0], [0], [1], [0, 0, 1, 1], [], []>} : vector<8x128xbf16>, vector<128x128xbf16>, vector<8x128xf32> -> vector<8x128xf32>
    %c0_14 = arith.constant 0 : index
    %c0_15 = arith.constant 0 : index
    %19 = vector.load %arg7[%c0_14, %c0_15] : memref<1x128xf32, #tpu.memory_space<vmem>>, vector<1x128xf32>
    %20 = vector.broadcast %19 : vector<1x128xf32> to vector<8x128xf32>
    %21 = arith.addf %18, %20 : vector<8x128xf32>
    %c0_16 = arith.constant 0 : index
    %c0_17 = arith.constant 0 : index
    %22 = vector.load %arg8[%c0_16, %c0_17] : memref<8x128xf32, #tpu.memory_space<vmem>>, vector<8x128xf32>
    tpu.vector_store %arg8[%c0_16, %c0_17], %21 {strides = array<i32>} : memref<8x128xf32, #tpu.memory_space<vmem>>, vector<8x128xf32>,
    return
  }
  func.func @transform_0(%arg0: i32) -> (i32, i32) {
    %c0_i32 = arith.constant 0 : i32
    %c0_i32_0 = arith.constant 0 : i32
    return %arg0, %c0_i32 : i32, i32
  }
  func.func @transform_1(%arg0: i32) -> (i32, i32) {
    %c0_i32 = arith.constant 0 : i32
    %c0_i32_0 = arith.constant 0 : i32
    %c0_i32_1 = arith.constant 0 : i32
    return %c0_i32, %c0_i32_0 : i32, i32
  }
  func.func @transform_2(%arg0: i32) -> (i32, i32) {
    %c0_i32 = arith.constant 0 : i32
    %c0_i32_0 = arith.constant 0 : i32
    %c0_i32_1 = arith.constant 0 : i32
    return %c0_i32, %c0_i32_0 : i32, i32
  }
  func.func @transform_3(%arg0: i32) -> (i32, i32) {
    %c0_i32 = arith.constant 0 : i32
    %c0_i32_0 = arith.constant 0 : i32
    %c0_i32_1 = arith.constant 0 : i32
    return %c0_i32, %c0_i32_0 : i32, i32
  }
  func.func @transform_4(%arg0: i32) -> (i32, i32) {
    %c0_i32 = arith.constant 0 : i32
    %c0_i32_0 = arith.constant 0 : i32
    %c0_i32_1 = arith.constant 0 : i32
    return %c0_i32, %c0_i32_0 : i32, i32
  }
  func.func @transform_5(%arg0: i32) -> (i32, i32) {
    %c0_i32 = arith.constant 0 : i32
    %c0_i32_0 = arith.constant 0 : i32
    %c0_i32_1 = arith.constant 0 : i32
    return %c0_i32, %c0_i32_0 : i32, i32
  }
  func.func @transform_6(%arg0: i32) -> (i32, i32) {
    %c0_i32 = arith.constant 0 : i32
    %c0_i32_0 = arith.constant 0 : i32
    %c0_i32_1 = arith.constant 0 : i32
    return %c0_i32, %c0_i32_0 : i32, i32
  }
  func.func @transform_7(%arg0: i32) -> (i32, i32) {
    %c0_i32 = arith.constant 0 : i32
    %c0_i32_0 = arith.constant 0 : i32
    return %arg0, %c0_i32 : i32, i32
  }
}

</mosaic_0001>

<bundles_post_ra>
// kernel: tpu_custom_call.1
= control target key start
LH: loop header
LB: loop body
LE: loop exit
PB: predicated region body
PF: predicated region fallthrough
CT: control target
= control target key end

     0   :  { %12 = vsyncpa [#allocation3], 0  ;;  %s688_s0 = inlined_call_operand.hbm [shape: f32[8,128], index: 0, kind: input, shape index: {}]   ;;  %s689_s1 = inlined_call_operand.hbm [shape: bf16[128,128], index: 1, kind: input, shape index: {}]   ;;  %s690_s2 = inlined_call_operand.vmem [shape: f32[1,128], index: 2, kind: input, shape index: {}]   ;;  %s691_s3 = inlined_call_operand.hbm [shape: bf16[128,128], index: 3, kind: input, shape index: {}]   ;;  %s692_s4 = inlined_call_operand.vmem [shape: f32[1,128], index: 4, kind: input, shape index: {}]   ;;  %s693_s5 = inlined_call_operand.hbm [shape: bf16[128,128], index: 5, kind: input, shape index: {}]   ;;  %s694_s6 = inlined_call_operand.vmem [shape: f32[1,128], index: 6, kind: input, shape index: {}]   ;;  %s695_s7 = inlined_call_operand.hbm [shape: f32[8,128], index: 7, kind: output, shape index: {}]  }
   0x1   :  { %13 = vsyncpa [#allocation6], 0 }
   0x2   :  { %14 = vsyncpa [#allocation9], 0  ;;  %s31_s26 = sshll.u32 %s689_s1, 4  ;;  %s32_s26 = int_to_ptr.hbm [resolvable:$true] %s31_s26 }
   0x3   :  { %15 = vsyncpa [#allocation4], 0  ;;  %s617_s27 = smov [#allocation5]   ;;  %s21_s8 = sshll.u32 %s688_s0, 4  ;;  %s22_s8 = int_to_ptr.hbm [resolvable:$true] %s21_s8 }
   0x4   :  { %s33_s28 = sshll.u32 %s617_s27, 4  ;;  %s618_s9 = smov 64   ;;  %s34_s28 = int_to_ptr.vmem [resolvable:$true] %s33_s28 }
   0x5   :  { %s619_s10 = smov 4   ;;  %s620_s11 = smov [#allocation2]  }
   0x6   :  { %39 = dma.hbm_to_vmem [thread:$0]  %s32_s26, 1024, %s34_s28, [#allocation6], %s618_s9, %s618_s9, %s619_s10  }
   0x7   :  { %s23_s12 = sshll.u32 %s620_s11, 4  ;;  %s46_s15 = sshll.u32 %s691_s3, 4  ;;  %s24_s12 = int_to_ptr.vmem [resolvable:$true] %s23_s12  ;;  %s47_s15 = int_to_ptr.hbm [resolvable:$true] %s46_s15 }
   0x8   :  { %26 = dma.hbm_to_vmem [thread:$0]  %s22_s8, 128, %s24_s12, [#allocation3]  }
   0x9   :  { %s61_s17 = sshll.u32 %s693_s5, 4  ;;  %s621_s18 = smov [#allocation7]   ;;  %s62_s17 = int_to_ptr.hbm [resolvable:$true] %s61_s17 }
   0xa   :  { %s48_s19 = sshll.u32 %s621_s18, 4  ;;  %s622_s0 = smov [#allocation8]   ;;  %s49_s19 = int_to_ptr.vmem [resolvable:$true] %s48_s19 }
   0xb   :  { %54 = dma.hbm_to_vmem [thread:$0]  %s47_s15, 1024, %s49_s19, [#allocation6], %s618_s9, %s618_s9, %s619_s10  }
   0xc   :  { %s63_s20 = sshll.u32 %s622_s0, 4  ;;  %s64_s20 = int_to_ptr.vmem [resolvable:$true] %s63_s20 }
   0xd   :  { %69 = dma.hbm_to_vmem [thread:$0]  %s62_s17, 1024, %s64_s20, [#allocation9], %s618_s9, %s618_s9, %s619_s10  }
   0xe   :  { %609 = dma.done.wait [#allocation3], 128  }
   0xf   :  { %610 = vsyncadd [#allocation3], 4294967168 }
  0x10   :  { %611 = dma.done.wait [#allocation6], 2048  }
  0x11   :  { %612 = vsyncadd [#allocation6], 4294965248 }
  0x12   :  { %613 = dma.done.wait [#allocation9], 1024  }
  0x13   :  { %614 = vsyncadd [#allocation9], 4294966272  ;;  %v460_v0 = vld [vmem:[#allocation5 + $0x38] sm:$0xff]  ;;  %v459_v1 = vld [vmem:[#allocation5 + $0x30] sm:$0xff]  ;;  %s623_s24 = smov [#allocation10]   ;;  %s345_s28 = sshll.u32 %s695_s7, 4  ;;  %s346_s28 = int_to_ptr.hbm [resolvable:$true] %s345_s28 }
  0x14   :  { %158 = vmatpush.bf16.msra.mxu0 %v460_v0  ;;  %v468_v2 = vld [vmem:[#allocation7 + $0x38] sm:$0xff]  ;;  %v467_v3 = vld [vmem:[#allocation7 + $0x30] sm:$0xff]  ;;  %v458_v4 = vld [vmem:[#allocation5 + $0x28] sm:$0xff]  ;;  %s343_s25 = sshll.u32 %s623_s24, 4  ;;  %s344_s25 = int_to_ptr.vmem [resolvable:$true] %s343_s25 }
  0x15   :  { %241 = vmatpush.bf16.msra.mxu1 %v468_v2  ;;  %v466_v5 = vld [vmem:[#allocation7 + $0x28] sm:$0xff]  ;;  %v457_v6 = vld [vmem:[#allocation5 + $0x20] sm:$0xff]  ;;  %v456_v8 = vld [vmem:[#allocation5 + $0x18] sm:$0xff] }
  0x16   :  { %v465_v7 = vld [vmem:[#allocation7 + $0x20] sm:$0xff]  ;;  %v464_v9 = vld [vmem:[#allocation7 + $0x18] sm:$0xff]  ;;  %v455_v10 = vld [vmem:[#allocation5 + $0x10] sm:$0xff] }
  0x17   :  { %v463_v11 = vld [vmem:[#allocation7 + $0x10] sm:$0xff]  ;;  %v454_v12 = vld [vmem:[#allocation5 + $0x8] sm:$0xff]  ;;  %v453_v13 = vld [vmem:[#allocation5] sm:$0xff] }
  0x18   :  { %159 = vmatpush.bf16.msra.mxu0 %v459_v1  ;;  %v88_v14 = vld [vmem:[#allocation2] sm:$0xff]  ;;  %v462_v16 = vld [vmem:[#allocation7 + $0x8] sm:$0xff]  ;;  %v461_v17 = vld [vmem:[#allocation7] sm:$0xff] }
  0x19   :  { %242 = vmatpush.bf16.msra.mxu1 %v467_v3  ;;  %v89_v15 = vpack.c.bf16 %v88_v14, %v88_v14  ;;  %v476_v18 = vld [vmem:[#allocation8 + $0x38] sm:$0xff]  ;;  %v475_v19 = vld [vmem:[#allocation8 + $0x30] sm:$0xff]  ;;  %v474_v20 = vld [vmem:[#allocation8 + $0x28] sm:$0xff] }
  0x1a   :  { %324 = vmatpush.bf16.msra.mxu2 %v476_v18  ;;  %v473_v21 = vld [vmem:[#allocation8 + $0x20] sm:$0xff]  ;;  %v472_v22 = vld [vmem:[#allocation8 + $0x18] sm:$0xff]  ;;  %v471_v29 = vld [vmem:[#allocation8 + $0x10] sm:$0xff] }
  0x1b   :  { %v484_v23 = vld [vmem:[%s690_s2] ss:$0 sm:$0xff]  ;;  %v470_v30 = vld [vmem:[#allocation8 + $0x8] sm:$0xff]  ;;  %v469_v31 = vld [vmem:[#allocation8] sm:$0xff] }
  0x1c   :  { %160 = vmatpush.bf16.msra.mxu0 %v458_v4  ;;  %v485_v32 = vld [vmem:[%s692_s4] ss:$0 sm:$0xff] }
  0x1d   :  { %243 = vmatpush.bf16.msra.mxu1 %v466_v5  ;;  %v486_v38 = vld [vmem:[%s694_s6] ss:$0 sm:$0xff] }
  0x1e   :  { %325 = vmatpush.bf16.msra.mxu2 %v475_v19 }
  0x20   :  { %161 = vmatpush.bf16.msra.mxu0 %v457_v6 }
  0x21   :  { %244 = vmatpush.bf16.msra.mxu1 %v465_v7 }
  0x22   :  { %326 = vmatpush.bf16.msra.mxu2 %v474_v20 }
  0x24   :  { %162 = vmatpush.bf16.msra.mxu0 %v456_v8 }
  0x25   :  { %245 = vmatpush.bf16.msra.mxu1 %v464_v9 }
  0x26   :  { %327 = vmatpush.bf16.msra.mxu2 %v473_v21 }
  0x28   :  { %163 = vmatpush.bf16.msra.mxu0 %v455_v10 }
  0x29   :  { %246 = vmatpush.bf16.msra.mxu1 %v463_v11 }
  0x2a   :  { %328 = vmatpush.bf16.msra.mxu2 %v472_v22 }
  0x2c   :  { %164 = vmatpush.bf16.msra.mxu0 %v454_v12 }
  0x2d   :  { %247 = vmatpush.bf16.msra.mxu1 %v462_v16 }
  0x2e   :  { %329 = vmatpush.bf16.msra.mxu2 %v471_v29 }
  0x30   :  { %165 = vmatpush.bf16.msra.mxu0 %v453_v13 }
  0x31   :  { %248 = vmatpush.bf16.msra.mxu1 %v461_v17 }
  0x32   :  { %330 = vmatpush.bf16.msra.mxu2 %v470_v30 }
  0x33   :  { %166 = vmatmul.bf16.vlgmr.msra.gmra.mxu0 %v89_v15 }
  0x36   :  { %331 = vmatpush.bf16.msra.mxu2 %v469_v31 }
  0xb0   :  { %v167_v24 = vpop.f32.mrf.mxu0 }
  0xb1   :  { %v168_v25 = vadd.f32 %v484_v23, %v167_v24 }
  0xb3   :  { %v171_v26 = vmax.f32 %v168_v25, 0.0 }
  0xb5   :  { %v172_v27 = vpack.c.bf16 %v171_v26, %v171_v26 }
  0xb7   :  { %249 = vmatmul.bf16.vlgmr.msra.gmra.mxu1 %v172_v27 }
  0xb8   :  { %v169_v28 = vpop.f32.mrf.mxu0 }
 0x134   :  { %v250_v33 = vpop.f32.mrf.mxu1 }
 0x135   :  { %v251_v34 = vadd.f32 %v485_v32, %v250_v33 }
 0x137   :  { %487 = vtanh.f32 %v251_v34 }
 0x13c   :  { %v252_v35 = vpop.f32.mrf.mxu1 }
 0x13d   :  { %v488_v36 = vpop.eup %487 }
 0x13e   :  { %v255_v37 = vpack.c.bf16 %v488_v36, %v488_v36 }
 0x140   :  { %332 = vmatmul.bf16.vlgmr.msra.gmra.mxu2 %v255_v37 }
 0x1c3   :  { %v333_v39 = vpop.f32.mrf.mxu2 }
 0x1c4   :  { %v334_v40 = vadd.f32 %v486_v38, %v333_v39 }
 0x1c6   :  { %337 = vst [vmem:[#allocation10] sm:$0xff] %v334_v40 }
 0x1c7   :  { %348 = dma.vmem_to_hbm [thread:$0]  %s344_s25, 128, %s346_s28, [#allocation4]  }
 0x1cb   :  { %v335_v41 = vpop.f32.mrf.mxu2 }
 0x1cc   :  { %615 = dma.done.wait [#allocation4], 128  }
 0x1cd   :  { %616 = vsyncadd [#allocation4], 4294967168 }
 0x1ce   :  { %353 = vsyncpa [#allocation3], 1 }
 0x1cf   :  { %354 = vsyncpa [#allocation6], 1 }
 0x1d0   :  { %355 = vsyncpa [#allocation9], 1 }
 0x1d1   :  { %356 = vsyncpa [#allocation4], 1 }

</bundles_post_ra>
